<compile_context>
chip_gen: v5e
topology: v5e:2x2
jax: 0.10.0
libtpu: 0.0.40
codegen_flags: <defaults>
</compile_context>

<pallas_src>
import functools

import jax
import jax.numpy as jnp
from jax.experimental import pallas as pl
from jax.experimental.pallas import tpu as pltpu


def _round_up(x: int, m: int) -> int:
    return (x + m - 1) // m * m


def _sublane_multiple(dtype) -> int:
    # Sub-32-bit dtypes pack along sublanes: f32 -> 8, bf16 -> 16, int8/fp8 -> 32.
    return {4: 8, 2: 16, 1: 32}[jnp.dtype(dtype).itemsize]


# Representative members of utils.activate; unknown names fall back to identity.
# TODO(synk): map the remaining utils.activate members if the model uses them.
_ACTIVATIONS = {
    "relu": lambda v: jnp.maximum(v, 0.0),
    "tanh": jnp.tanh,
    "sigmoid": jax.nn.sigmoid,
    "gelu": jax.nn.gelu,
    "id": lambda v: v,
    None: lambda v: v,
}
_TRANSCENDENTAL_ACTS = ("tanh", "sigmoid", "gelu")


def _dense_kernel(x_ref, w_ref, b_ref, o_ref, *scratch, act_fn, precision):
    """One (tm, tn) output tile; grid axis 2 (K) is the reduction axis.

    If a scratch ref is supplied it is the f32 accumulator (used for
    low-precision outputs); otherwise the f32 output block itself is the
    accumulator (it stays resident across K because its index_map ignores k).
    """
    acc_ref = scratch[0] if scratch else o_ref
    k = pl.program_id(2)

    partial_sum = jnp.dot(
        x_ref[...], w_ref[...],
        preferred_element_type=jnp.float32, precision=precision,
    )

    @pl.when(k == 0)
    def _init():
        acc_ref[...] = partial_sum

    @pl.when(k != 0)
    def _accumulate():
        acc_ref[...] += partial_sum

    @pl.when(k == pl.num_programs(2) - 1)
    def _finalize():
        # Bias + activation once per output tile (epilogue).
        y = act_fn(acc_ref[...] + b_ref[...].astype(jnp.float32))
        o_ref[...] = y.astype(o_ref.dtype)


@functools.partial(
    jax.jit, static_argnames=("activation", "tm", "tn", "tk", "precision")
)
def dense_forward(x, w, b, *, activation="relu", tm=512, tn=512, tk=2048,
                  precision=None):
    """act(x @ w + b) — Pallas tiled matmul with fused bias + activation.

    x: [B, D_in], w: [D_in, D_out] (pre-transposed nn.Linear weight), b: [D_out].
    Output dtype follows x.dtype (bf16 inputs use an f32 VMEM accumulator).
    """
    B, D_in = x.shape
    Kw, D_out = w.shape
    if Kw != D_in:
        raise ValueError("w must be [D_in, D_out] (pre-transposed nn.Linear weight)")

    in_dtype = x.dtype
    out_dtype = x.dtype
    act_fn = _ACTIVATIONS.get(activation, _ACTIVATIONS["id"])

    sub = _sublane_multiple(in_dtype)
    Ma = _round_up(B, sub)          # dtype-aware sublane alignment
    Na = _round_up(D_out, 128)      # lane alignment
    Ka = _round_up(D_in, 128)

    # Clamp tiles to the aligned problem size (keeps blocks (8,128)-legal).
    tm = min(tm, Ma)
    tn = min(tn, Na)
    tk = min(tk, Ka)
    # Balance K tiles so K padding stays small when Ka is not a tk multiple.
    if Ka % tk:
        nk = -(-Ka // tk)
        tk = _round_up(-(-Ka // nk), 128)

    # v7x megacore: if the whole problem is a single (M, N) tile, split N into two
    # lane-aligned tiles so both TensorCores get work (v5e/v6e: 1 TC, unaffected).
    if Ma <= tm and Na // tn < 2 and Na >= 256:
        half = _round_up(Na // 2, 128)
        if Na % half == 0:
            tn = min(tn, half)

    Mp = _round_up(Ma, tm)
    Np = _round_up(Na, tn)
    Kp = _round_up(Ka, tk)

    # Pad only when needed — with tile-aligned shapes (typical MLP dims) no copy
    # is emitted at all.  For static per-layer weights, pass pre-aligned w/b so
    # only a ragged batch edge (cheap) can ever pad on the hot path.
    xp = x if (Mp, Kp) == (B, D_in) else jnp.pad(x, ((0, Mp - B), (0, Kp - D_in)))
    wp = w if (Kp, Np) == (D_in, D_out) else jnp.pad(w, ((0, Kp - D_in), (0, Np - D_out)))
    bp = (b if Np == D_out else jnp.pad(b, (0, Np - D_out))).reshape(1, Np)

    # f32 outputs accumulate in-place into the resident output block; only
    # low-precision outputs need a separate f32 scratch accumulator.
    use_acc = out_dtype != jnp.float32
    scratch = [pltpu.VMEM((tm, tn), jnp.float32)] if use_acc else []

    in_bytes = jnp.dtype(in_dtype).itemsize
    out_bytes = jnp.dtype(out_dtype).itemsize
    b_bytes = jnp.dtype(b.dtype).itemsize

    # VMEM budget: double-buffered tiles (+acc) with headroom, capped well below
    # v7x's 64 MiB physical VMEM; never below the 32 MiB scoped default.
    dbuf = 2 * (tm * tk * in_bytes + tk * tn * in_bytes + tn * b_bytes
                + tm * tn * out_bytes)
    if use_acc:
        dbuf += tm * tn * 4
    vmem_limit = int(min(max(32 << 20, dbuf + (8 << 20)), 48 << 20))

    grid = (Mp // tm, Np // tn, Kp // tk)
    kernel = functools.partial(_dense_kernel, act_fn=act_fn, precision=precision)

    flops = 2 * Mp * Np * Kp
    transcendentals = Mp * Np if activation in _TRANSCENDENTAL_ACTS else 0
    bytes_accessed = int(
        Mp * Kp * in_bytes * (Np // tn)      # x streamed once per N tile
        + Kp * Np * in_bytes * (Mp // tm)    # w streamed once per M tile
        + Np * b_bytes * (Mp // tm)          # bias per M tile
        + Mp * Np * out_bytes                # output written once
    )

    out = pl.pallas_call(
        kernel,
        out_shape=jax.ShapeDtypeStruct((Mp, Np), out_dtype),
        grid_spec=pltpu.PrefetchScalarGridSpec(
            num_scalar_prefetch=0,
            grid=grid,
            in_specs=[
                pl.BlockSpec((tm, tk), lambda i, j, k: (i, k)),   # x tile
                pl.BlockSpec((tk, tn), lambda i, j, k: (k, j)),   # w tile
                pl.BlockSpec((1, tn), lambda i, j, k: (0, j)),    # bias tile (per N)
            ],
            out_specs=pl.BlockSpec((tm, tn), lambda i, j, k: (i, j)),
            scratch_shapes=scratch,
        ),
        compiler_params=pltpu.CompilerParams(
            dimension_semantics=("parallel", "parallel", "arbitrary"),
            vmem_limit_bytes=vmem_limit,
        ),
        cost_estimate=pl.CostEstimate(
            flops=flops,
            transcendentals=transcendentals,
            bytes_accessed=bytes_accessed,
        ),
    )(xp, wp, bp)

    return out[:B, :D_out]


def _reference(x, w, b, activation="relu"):
    y = x.astype(jnp.float32) @ w.astype(jnp.float32) + b.astype(jnp.float32)[None, :]
    return _ACTIVATIONS[activation](y)


if __name__ == "__main__":
    key = jax.random.PRNGKey(0)
    keys = jax.random.split(key, 9)

    # --- Case 1: Dense(32, 64, 'relu') at batch 8 — small module-spec shape. ---
    B, D_in, D_out = 8, 32, 64
    x = jax.random.normal(keys[0], (B, D_in), dtype=jnp.float32)
    bound = 1.0 / jnp.sqrt(jnp.float32(D_in))          # nn.Linear default init
    w_torch = jax.random.uniform(keys[1], (D_out, D_in), minval=-bound, maxval=bound,
                                 dtype=jnp.float32)    # PyTorch layout [out, in]
    b = jax.random.uniform(keys[2], (D_out,), minval=-bound, maxval=bound,
                           dtype=jnp.float32)
    w = w_torch.T                                      # [D_in, D_out] for the kernel

    out = jax.block_until_ready(dense_forward(x, w, b, activation="relu"))
    ref = _reference(x, w, b, "relu")
    assert out.shape == (B, D_out)
    assert jnp.allclose(out, ref, atol=1e-5, rtol=1e-5), "small f32 mismatch"

    # --- Case 2: tile-aligned f32 shape (zero-pad-free path, megacore N split). ---
    B2, D_in2, D_out2 = 256, 1024, 512
    x2 = jax.random.normal(keys[3], (B2, D_in2), dtype=jnp.float32)
    bound2 = 1.0 / jnp.sqrt(jnp.float32(D_in2))
    w2 = jax.random.uniform(keys[4], (D_in2, D_out2), minval=-bound2, maxval=bound2,
                            dtype=jnp.float32)
    b2 = jax.random.uniform(keys[5], (D_out2,), minval=-bound2, maxval=bound2,
                            dtype=jnp.float32)

    out2 = jax.block_until_ready(dense_forward(x2, w2, b2, activation="relu"))
    ref2 = _reference(x2, w2, b2, "relu")
    assert out2.shape == (B2, D_out2)
    assert jnp.allclose(out2, ref2, atol=5e-4, rtol=5e-4), "tiled f32 mismatch"

    # --- Case 3: native bf16 inputs (v6e/v7x fast path), f32 MXU accumulation. ---
    B3, D_in3, D_out3 = 64, 1024, 256
    x3 = jax.random.normal(keys[6], (B3, D_in3), dtype=jnp.float32).astype(jnp.bfloat16)
    bound3 = 1.0 / jnp.sqrt(jnp.float32(D_in3))
    w3 = jax.random.uniform(keys[7], (D_in3, D_out3), minval=-bound3, maxval=bound3,
                            dtype=jnp.float32).astype(jnp.bfloat16)
    b3 = jax.random.uniform(keys[8], (D_out3,), minval=-bound3, maxval=bound3,
                            dtype=jnp.float32).astype(jnp.bfloat16)

    out3 = jax.block_until_ready(dense_forward(x3, w3, b3, activation="tanh"))
    ref3 = _reference(x3, w3, b3, "tanh")
    assert out3.shape == (B3, D_out3)
    assert jnp.allclose(out3.astype(jnp.float32), ref3, atol=2e-2, rtol=2e-2), \
        "bf16 mismatch"

    print("KERNEL_OK")
</pallas_src>

<mosaic_0001>
module attributes {stable_mosaic.version = 11 : i64} {
  func.func @_dense_kernel(%arg0: i32, %arg1: i32, %arg2: i32, %arg3: memref<8x128xf32, #tpu.memory_space<vmem>>, %arg4: memref<128x128xf32, #tpu.memory_space<vmem>>, %arg5: memref<1x128xf32, #tpu.memory_space<vmem>>, %arg6: memref<8x128xf32, #tpu.memory_space<vmem>>) attributes {dimension_semantics = [#tpu.dimension_semantics<parallel>, #tpu.dimension_semantics<parallel>, #tpu.dimension_semantics<arbitrary>], iteration_bounds = array<i64: 1, 1, 1>, scalar_prefetch = 0 : i64, scratch_operands = 0 : i64, tpu.core_type = #tpu.core_type<tc>, window_params = [{transform_indices = @transform_0, window_bounds = array<i64: 8, 128>}, {transform_indices = @transform_1, window_bounds = array<i64: 128, 128>}, {transform_indices = @transform_2, window_bounds = array<i64: 1, 128>}, {transform_indices = @transform_3, window_bounds = array<i64: 8, 128>}]} {
    %c0 = arith.constant 0 : index
    %c0_0 = arith.constant 0 : index
    %0 = vector.load %arg3[%c0, %c0_0] : memref<8x128xf32, #tpu.memory_space<vmem>>, vector<8x128xf32>
    %c0_1 = arith.constant 0 : index
    %c0_2 = arith.constant 0 : index
    %1 = vector.load %arg4[%c0_1, %c0_2] : memref<128x128xf32, #tpu.memory_space<vmem>>, vector<128x128xf32>
    %cst = arith.constant dense<0.000000e+00> : vector<8x128xf32>
    %2 = tpu.matmul %0, %1, %cst {dimension_numbers = #tpu.dot_dimension_numbers<[1], [0], [0], [1], [0, 0, 1, 1], [], []>} : vector<8x128xf32>, vector<128x128xf32>, vector<8x128xf32> -> vector<8x128xf32>
    %c0_i32 = arith.constant 0 : i32
    %3 = arith.cmpi eq, %arg2, %c0_i32 : i32
    %4 = arith.extui %3 : i1 to i32
    %c0_i32_3 = arith.constant 0 : i32
    %5 = arith.cmpi ne, %4, %c0_i32_3 : i32
    scf.if %5 {
      %c0_8 = arith.constant 0 : index
      %c0_9 = arith.constant 0 : index
      %12 = vector.load %arg6[%c0_8, %c0_9] : memref<8x128xf32, #tpu.memory_space<vmem>>, vector<8x128xf32>
      tpu.vector_store %arg6[%c0_8, %c0_9], %2 {strides = array<i32>} : memref<8x128xf32, #tpu.memory_space<vmem>>, vector<8x128xf32>,
    } else {
    }
    %c0_i32_4 = arith.constant 0 : i32
    %6 = arith.cmpi ne, %arg2, %c0_i32_4 : i32
    %7 = arith.extui %6 : i1 to i32
    %c0_i32_5 = arith.constant 0 : i32
    %8 = arith.cmpi ne, %7, %c0_i32_5 : i32
    scf.if %8 {
      %c0_8 = arith.constant 0 : index
      %c0_9 = arith.constant 0 : index
      %12 = vector.load %arg6[%c0_8, %c0_9] : memref<8x128xf32, #tpu.memory_space<vmem>>, vector<8x128xf32>
      %13 = arith.addf %12, %2 : vector<8x128xf32>
      %c0_10 = arith.constant 0 : index
      %c0_11 = arith.constant 0 : index
      %14 = vector.load %arg6[%c0_10, %c0_11] : memref<8x128xf32, #tpu.memory_space<vmem>>, vector<8x128xf32>
      tpu.vector_store %arg6[%c0_10, %c0_11], %13 {strides = array<i32>} : memref<8x128xf32, #tpu.memory_space<vmem>>, vector<8x128xf32>,
    } else {
    }
    %c0_i32_6 = arith.constant 0 : i32
    %9 = arith.cmpi eq, %arg2, %c0_i32_6 : i32
    %10 = arith.extui %9 : i1 to i32
    %c0_i32_7 = arith.constant 0 : i32
    %11 = arith.cmpi ne, %10, %c0_i32_7 : i32
    scf.if %11 {
      %c0_8 = arith.constant 0 : index
      %c0_9 = arith.constant 0 : index
      %12 = vector.load %arg6[%c0_8, %c0_9] : memref<8x128xf32, #tpu.memory_space<vmem>>, vector<8x128xf32>
      %c0_10 = arith.constant 0 : index
      %c0_11 = arith.constant 0 : index
      %13 = vector.load %arg5[%c0_10, %c0_11] : memref<1x128xf32, #tpu.memory_space<vmem>>, vector<1x128xf32>
      %14 = vector.broadcast %13 : vector<1x128xf32> to vector<8x128xf32>
      %15 = arith.addf %12, %14 : vector<8x128xf32>
      %cst_12 = arith.constant 0.000000e+00 : f32
      %16 = vector.broadcast %cst_12 : f32 to vector<8x128xf32>
      %17 = arith.maximumf %15, %16 : vector<8x128xf32>
      %c0_13 = arith.constant 0 : index
      %c0_14 = arith.constant 0 : index
      %18 = vector.load %arg6[%c0_13, %c0_14] : memref<8x128xf32, #tpu.memory_space<vmem>>, vector<8x128xf32>
      tpu.vector_store %arg6[%c0_13, %c0_14], %17 {strides = array<i32>} : memref<8x128xf32, #tpu.memory_space<vmem>>, vector<8x128xf32>,
    } else {
    }
    return
  }
  func.func @transform_0(%arg0: i32, %arg1: i32, %arg2: i32) -> (i32, i32) {
    %c0_i32 = arith.constant 0 : i32
    return %arg0, %arg2 : i32, i32
  }
  func.func @transform_1(%arg0: i32, %arg1: i32, %arg2: i32) -> (i32, i32) {
    %c0_i32 = arith.constant 0 : i32
    return %arg2, %arg1 : i32, i32
  }
  func.func @transform_2(%arg0: i32, %arg1: i32, %arg2: i32) -> (i32, i32) {
    %c0_i32 = arith.constant 0 : i32
    %c0_i32_0 = arith.constant 0 : i32
    return %c0_i32, %arg1 : i32, i32
  }
  func.func @transform_3(%arg0: i32, %arg1: i32, %arg2: i32) -> (i32, i32) {
    %c0_i32 = arith.constant 0 : i32
    return %arg0, %arg1 : i32, i32
  }
}

</mosaic_0001>

<bundles_post_ra>
// kernel: dense_forward.1
= control target key start
LH: loop header
LB: loop body
LE: loop exit
PB: predicated region body
PF: predicated region fallthrough
CT: control target
= control target key end

     0   :  { %s197_s0 = inlined_call_operand.vmem [shape: f32[8,128], index: 0, kind: input, shape index: {}]   ;;  %s198_s1 = inlined_call_operand.vmem [shape: f32[128,128], index: 1, kind: input, shape index: {}]   ;;  %s199_s2 = inlined_call_operand.vmem [shape: f32[1,128], index: 2, kind: input, shape index: {}]   ;;  %s200_s3 = inlined_call_operand.hbm [shape: f32[8,128], index: 3, kind: output, shape index: {}]  }
   0x1   :  { %v31_v0 = vld [vmem:[%s198_s1 + $0x78] sm:$0xff]  ;;  %v30_v1 = vld [vmem:[%s198_s1 + $0x70] sm:$0xff]  ;;  %v29_v2 = vld [vmem:[%s198_s1 + $0x68] sm:$0xff] }
   0x2   :  { %32 = vmatpush.msra.mxu0 %v31_v0  ;;  %v28_v3 = vld [vmem:[%s198_s1 + $0x60] sm:$0xff]  ;;  %v27_v4 = vld [vmem:[%s198_s1 + $0x58] sm:$0xff] }
   0x4   :  { %33 = vmatpush.msra.mxu0 %v30_v1 }
   0x6   :  { %34 = vmatpush.msra.mxu0 %v29_v2 }
   0x7   :  { %8 = vsyncpa [#allocation3], 0  ;;  %v26_v5 = vld [vmem:[%s198_s1 + $0x50] sm:$0xff]  ;;  %v25_v6 = vld [vmem:[%s198_s1 + $0x48] sm:$0xff]  ;;  %s119_s21 = smov [#allocation2]   ;;  %s82_s25 = sshll.u32 %s200_s3, 4  ;;  %s83_s25 = int_to_ptr.hbm [resolvable:$true] %s82_s25 }
   0x8   :  { %35 = vmatpush.msra.mxu0 %v28_v3  ;;  %v24_v7 = vld [vmem:[%s198_s1 + $0x40] sm:$0xff]  ;;  %v23_v8 = vld [vmem:[%s198_s1 + $0x38] sm:$0xff]  ;;  %v22_v9 = vld [vmem:[%s198_s1 + $0x30] sm:$0xff]  ;;  %s80_s22 = sshll.u32 %s119_s21, 4  ;;  %s81_s22 = int_to_ptr.vmem [resolvable:$true] %s80_s22 }
   0x9   :  { %v21_v10 = vld [vmem:[%s198_s1 + $0x28] sm:$0xff]  ;;  %v20_v11 = vld [vmem:[%s198_s1 + $0x20] sm:$0xff]  ;;  %v19_v12 = vld [vmem:[%s198_s1 + $0x18] sm:$0xff] }
   0xa   :  { %36 = vmatpush.msra.mxu0 %v27_v4  ;;  %v18_v13 = vld [vmem:[%s198_s1 + $0x10] sm:$0xff]  ;;  %v17_v14 = vld [vmem:[%s198_s1 + $0x8] sm:$0xff]  ;;  %v16_v15 = vld [vmem:[%s198_s1] sm:$0xff] }
   0xb   :  { %v15_v16 = vld [vmem:[%s197_s0] sm:$0xff] }
   0xc   :  { %37 = vmatpush.msra.mxu0 %v26_v5  ;;  %v92_v17 = vld [vmem:[%s199_s2] ss:$0 sm:$0xff] }
   0xe   :  { %38 = vmatpush.msra.mxu0 %v25_v6 }
  0x10   :  { %39 = vmatpush.msra.mxu0 %v24_v7 }
  0x12   :  { %40 = vmatpush.msra.mxu0 %v23_v8 }
  0x14   :  { %41 = vmatpush.msra.mxu0 %v22_v9 }
  0x16   :  { %42 = vmatpush.msra.mxu0 %v21_v10 }
  0x18   :  { %43 = vmatpush.msra.mxu0 %v20_v11 }
  0x1a   :  { %44 = vmatpush.msra.mxu0 %v19_v12 }
  0x1c   :  { %45 = vmatpush.msra.mxu0 %v18_v13 }
  0x1e   :  { %46 = vmatpush.msra.mxu0 %v17_v14 }
  0x20   :  { %47 = vmatpush.msra.mxu0 %v16_v15 }
  0x21   :  { %48 = vmatmul.f32.vlgmr.msra.gmra.mxu0 %v15_v16 }
  0x9e   :  { %v49_v18 = vpop.f32.mrf.mxu0 }
  0x9f   :  { %v72_v19 = vadd.f32 %v92_v17, %v49_v18 }
  0xa1   :  { %v73_v20 = vmax.f32 %v72_v19, 0.0 }
  0xa3   :  { %74 = vst [vmem:[#allocation2] sm:$0xff] %v73_v20 }
  0xa4   :  { %85 = dma.vmem_to_hbm [thread:$0]  %s81_s22, 128, %s83_s25, [#allocation3]  }
  0xa5   :  { %117 = dma.done.wait [#allocation3], 128  }
  0xa6   :  { %118 = vsyncadd [#allocation3], 4294967168 }
  0xa7   :  { %90 = vsyncpa [#allocation3], 1 }

</bundles_post_ra>
